<compile_context>
chip_gen: v7x
topology: tpu7x:2x2x1
jax: 0.10.0
libtpu: 0.0.40
codegen_flags: <defaults>
</compile_context>

<pallas_src>
import functools
import math
from typing import NamedTuple, Optional

import jax
import jax.numpy as jnp
from jax.experimental import pallas as pl
from jax.experimental.pallas import tpu as pltpu


def _round_up(x, m):
    return (x + m - 1) // m * m


def _sublane_multiple(dtype) -> int:
    """Min second-to-last tile dim for a dtype (packing along sublanes)."""
    itemsize = jnp.dtype(dtype).itemsize
    if itemsize >= 4:
        return 8
    if itemsize == 2:
        return 16
    return 32


# ---------------------------------------------------------------------------
# Kernels
# ---------------------------------------------------------------------------
def _gate_up_kernel_multi_k(x_ref, w_ref, b_ref, o_ref, acc_ref):
    """Multi-K-step variant: f32 accumulator carried across grid axis 2.

    w_ref holds a K-tile of the block-interleaved [Ws | Wm] weight: columns
    [:tn] are gate weights, [tn:] up weights for this output tile.
    """
    k = pl.program_id(2)

    @pl.when(k == 0)
    def _init():
        # Fold bias into the accumulator init (removes an epilogue VPU add).
        acc_ref[...] = jnp.broadcast_to(b_ref[...], acc_ref.shape)

    # Native-dtype operands on the MXU, f32 accumulation.
    acc_ref[...] += jnp.dot(
        x_ref[...], w_ref[...], preferred_element_type=jnp.float32
    )

    @pl.when(k == pl.num_programs(2) - 1)
    def _finalize():
        tn = o_ref.shape[-1]
        acc = acc_ref[...]
        gate = acc[:, :tn]
        up = acc[:, tn:]
        # silu(gate) * up, f32 vregs, cast only at the final store.
        o_ref[...] = (gate * jax.nn.sigmoid(gate) * up).astype(o_ref.dtype)


def _gate_up_kernel_single_k(x_ref, w_ref, b_ref, o_ref):
    """Single-K-step variant: no accumulator scratch round trip."""
    tn = o_ref.shape[-1]
    acc = jnp.dot(x_ref[...], w_ref[...], preferred_element_type=jnp.float32)
    acc = acc + b_ref[...]
    gate = acc[:, :tn]
    up = acc[:, tn:]
    o_ref[...] = (gate * jax.nn.sigmoid(gate) * up).astype(o_ref.dtype)


# ---------------------------------------------------------------------------
# One-time weight preparation (hoisted out of the per-call path)
# ---------------------------------------------------------------------------
class PreparedGateUp(NamedTuple):
    w_cat: jax.Array   # (Kp, 2*Np) block-interleaved [Ws | Wm] (per tn tile)
    b_cat: jax.Array   # (1, 2*Np) float32, same interleave
    n_out: int         # original N (out_features)
    k_in: int          # original K (in_features)
    tn: int            # N tile the interleave was built for
    tk: int            # K tile the padding was built for


def prepare_gate_up(w_s, b_s: Optional[jax.Array], w_m,
                    b_m: Optional[jax.Array], *,
                    block_n: int = 512, block_k: int = 1024) -> PreparedGateUp:
    """Transpose, pad, and block-interleave gate/up weights ONCE at load time."""
    N, K = w_s.shape
    assert w_m.shape == (N, K)

    tn = min(block_n, _round_up(N, 128))          # lane multiple
    tk = min(block_k, _round_up(K, 128))          # lane (x) & sublane (w) safe
    Np = _round_up(N, tn)
    Kp = _round_up(K, tk)

    ws_t = w_s.T                                   # (K, N)
    wm_t = w_m.T
    if (Kp, Np) != (K, N):
        ws_t = jnp.pad(ws_t, ((0, Kp - K), (0, Np - N)))
        wm_t = jnp.pad(wm_t, ((0, Kp - K), (0, Np - N)))

    bs = (b_s.astype(jnp.float32) if b_s is not None
          else jnp.zeros((N,), jnp.float32))
    bm = (b_m.astype(jnp.float32) if b_m is not None
          else jnp.zeros((N,), jnp.float32))
    if Np != N:
        bs = jnp.pad(bs, (0, Np - N))
        bm = jnp.pad(bm, (0, Np - N))

    # Block-interleave gate/up per tn tile so ONE matmul feeds both halves.
    nb = Np // tn
    w_cat = jnp.concatenate(
        [ws_t.reshape(Kp, nb, 1, tn), wm_t.reshape(Kp, nb, 1, tn)], axis=2
    ).reshape(Kp, 2 * Np)
    b_cat = jnp.concatenate(
        [bs.reshape(nb, 1, tn), bm.reshape(nb, 1, tn)], axis=1
    ).reshape(1, 2 * Np)

    return PreparedGateUp(w_cat=w_cat, b_cat=b_cat,
                          n_out=N, k_in=K, tn=tn, tk=tk)


# ---------------------------------------------------------------------------
# Compute path (jitted; no weight reshuffling here)
# ---------------------------------------------------------------------------
@functools.partial(
    jax.jit, static_argnames=("n_out", "k_in", "tn", "tk", "block_m"))
def _linear_silu_mul_impl(x, w_cat, b_cat, *, n_out, k_in, tn, tk, block_m):
    orig_shape = x.shape
    K = orig_shape[-1]
    assert K == k_in, f"x last dim {K} != weight in_features {k_in}"
    x2d = x.reshape(-1, K)
    M = x2d.shape[0]
    N = n_out
    Kp = w_cat.shape[0]
    Np = w_cat.shape[1] // 2

    in_is = jnp.dtype(x.dtype).itemsize
    w_is = jnp.dtype(w_cat.dtype).itemsize
    out_is = in_is

    # ---- dtype-aware sublane rounding for the M tile ----------------------
    sub_m = _sublane_multiple(x.dtype)
    tm = min(block_m, _round_up(M, sub_m))

    # ---- VMEM budget (double buffers + f32 acc), per-chip cap -------------
    try:
        phys_vmem = pltpu.get_tpu_info().vmem_capacity_bytes
    except Exception:
        phys_vmem = 64 * 1024 * 1024               # v7x-safe assumption
    cap = min((3 * phys_vmem) // 4, 96 * 1024 * 1024)

    def need(tm_):
        return (2 * tm_ * tk * in_is               # x tile, double buffered
                + 2 * tk * 2 * tn * w_is           # [Ws|Wm] tile, x2 buffers
                + 2 * 2 * tn * 4                   # bias tile
                + 2 * tm_ * tn * out_is            # out tile, x2 buffers
                + tm_ * 2 * tn * 4)                # f32 accumulator

    while need(tm) > cap and tm > sub_m:
        tm = max(sub_m, _round_up(tm // 2, sub_m))

    Mp = _round_up(M, tm)
    # Megacore guard: keep >= 2 output blocks so both v7x TCs get work.
    if (Mp // tm) * (Np // tn) == 1 and Mp >= 2 * sub_m:
        tm = max(sub_m, _round_up(Mp // 2, sub_m))
        Mp = _round_up(M, tm)

    if (Mp, Kp) != (M, K):
        x2d = jnp.pad(x2d, ((0, Mp - M), (0, Kp - K)))

    num_k = Kp // tk
    grid_mn = (Mp // tm, Np // tn)

    cost = pl.CostEstimate(
        flops=2 * Mp * (2 * Np) * Kp,
        transcendentals=Mp * Np,                   # sigmoid in the epilogue
        bytes_accessed=(Mp * Kp * in_is + Kp * 2 * Np * w_is
                        + 2 * Np * 4 + Mp * Np * out_is),
    )
    vmem_limit = int(min(max(need(tm) + (8 << 20), 16 << 20), cap))

    if num_k == 1:
        # Single-K-step fast path: no accumulator scratch at all.
        out = pl.pallas_call(
            _gate_up_kernel_single_k,
            out_shape=jax.ShapeDtypeStruct((Mp, Np), x.dtype),
            grid_spec=pltpu.PrefetchScalarGridSpec(
                num_scalar_prefetch=0,
                grid=grid_mn,
                in_specs=[
                    pl.BlockSpec((tm, tk), lambda i, j: (i, 0)),        # x
                    pl.BlockSpec((tk, 2 * tn), lambda i, j: (0, j)),    # [Ws|Wm]
                    pl.BlockSpec((1, 2 * tn), lambda i, j: (0, j)),     # [bs|bm]
                ],
                out_specs=pl.BlockSpec((tm, tn), lambda i, j: (i, j)),
            ),
            compiler_params=pltpu.CompilerParams(
                dimension_semantics=("parallel", "parallel"),
                vmem_limit_bytes=vmem_limit,
            ),
            cost_estimate=cost,
        )(x2d, w_cat, b_cat)
    else:
        out = pl.pallas_call(
            _gate_up_kernel_multi_k,
            out_shape=jax.ShapeDtypeStruct((Mp, Np), x.dtype),
            grid_spec=pltpu.PrefetchScalarGridSpec(
                num_scalar_prefetch=0,
                grid=grid_mn + (num_k,),
                in_specs=[
                    pl.BlockSpec((tm, tk), lambda i, j, k: (i, k)),       # x
                    pl.BlockSpec((tk, 2 * tn), lambda i, j, k: (k, j)),   # [Ws|Wm]
                    pl.BlockSpec((1, 2 * tn), lambda i, j, k: (0, j)),    # [bs|bm]
                ],
                out_specs=pl.BlockSpec((tm, tn), lambda i, j, k: (i, j)),
                scratch_shapes=[pltpu.VMEM((tm, 2 * tn), jnp.float32)],
            ),
            compiler_params=pltpu.CompilerParams(
                dimension_semantics=("parallel", "parallel", "arbitrary"),
                vmem_limit_bytes=vmem_limit,
            ),
            cost_estimate=cost,
        )(x2d, w_cat, b_cat)

    out = out[:M, :N]
    return out.reshape(*orig_shape[:-1], N)


def linear_silu_mul_prepared(x, prepared: PreparedGateUp, *, block_m: int = 512):
    """silu(x @ Ws^T + bs) * (x @ Wm^T + bm) with pre-interleaved weights."""
    return _linear_silu_mul_impl(
        x, prepared.w_cat, prepared.b_cat,
        n_out=prepared.n_out, k_in=prepared.k_in,
        tn=prepared.tn, tk=prepared.tk, block_m=block_m)


def linear_silu_mul(x, w_s, b_s, w_m, b_m, *,
                    block_m=512, block_n=512, block_k=1024):
    """Convenience one-shot path (re-preps weights every call).

    For production use, call prepare_gate_up() ONCE at weight-load time and
    then linear_silu_mul_prepared() per forward step.
    """
    prepared = prepare_gate_up(w_s, b_s, w_m, b_m,
                               block_n=block_n, block_k=block_k)
    return linear_silu_mul_prepared(x, prepared, block_m=block_m)


def _reference(x, w_s, b_s, w_m, b_m):
    x32 = x.astype(jnp.float32)
    gate = x32 @ w_s.T.astype(jnp.float32) + b_s.astype(jnp.float32)
    up = x32 @ w_m.T.astype(jnp.float32) + b_m.astype(jnp.float32)
    return jax.nn.silu(gate) * up


if __name__ == "__main__":
    key = jax.random.PRNGKey(0)
    keys = jax.random.split(key, 15)

    # --- Test 1: small module-spec shapes (single-K path, megacore split) --
    batch, seq, hidden, inter = 2, 8, 32, 64
    bound = 1.0 / math.sqrt(hidden)
    x = jax.random.normal(keys[0], (batch, seq, hidden), jnp.float32)
    w_s = jax.random.uniform(keys[1], (inter, hidden), jnp.float32, -bound, bound)
    b_s = jax.random.uniform(keys[2], (inter,), jnp.float32, -bound, bound)
    w_m = jax.random.uniform(keys[3], (inter, hidden), jnp.float32, -bound, bound)
    b_m = jax.random.uniform(keys[4], (inter,), jnp.float32, -bound, bound)

    prep1 = prepare_gate_up(w_s, b_s, w_m, b_m)          # once, at load time
    out = jax.block_until_ready(linear_silu_mul_prepared(x, prep1))
    ref = _reference(x, w_s, b_s, w_m, b_m)
    assert out.shape == (batch, seq, inter)
    assert jnp.allclose(out, ref, atol=1e-5, rtol=1e-5), "test1 mismatch"

    # --- Test 2: M padding, N tiling (block interleave), multi-K reduction -
    batch2, seq2, hidden2, inter2 = 3, 7, 384, 512
    bound2 = 1.0 / math.sqrt(hidden2)
    x2 = jax.random.normal(keys[5], (batch2, seq2, hidden2), jnp.float32)
    w_s2 = jax.random.uniform(keys[6], (inter2, hidden2), jnp.float32, -bound2, bound2)
    b_s2 = jax.random.uniform(keys[7], (inter2,), jnp.float32, -bound2, bound2)
    w_m2 = jax.random.uniform(keys[8], (inter2, hidden2), jnp.float32, -bound2, bound2)
    b_m2 = jax.random.uniform(keys[9], (inter2,), jnp.float32, -bound2, bound2)

    prep2 = prepare_gate_up(w_s2, b_s2, w_m2, b_m2, block_n=256, block_k=128)
    out2 = jax.block_until_ready(
        linear_silu_mul_prepared(x2, prep2, block_m=64))
    ref2 = _reference(x2, w_s2, b_s2, w_m2, b_m2)
    assert out2.shape == (batch2, seq2, inter2)
    assert jnp.allclose(out2, ref2, atol=1e-4, rtol=1e-3), "test2 mismatch"

    # --- Test 3: bf16 decode-style (tiny M), dtype-aware sublane rounding --
    batch3, seq3, hidden3, inter3 = 1, 4, 256, 512
    bound3 = 1.0 / math.sqrt(hidden3)
    x3 = jax.random.normal(keys[10], (batch3, seq3, hidden3)).astype(jnp.bfloat16)
    w_s3 = jax.random.uniform(keys[11], (inter3, hidden3), jnp.float32,
                              -bound3, bound3).astype(jnp.bfloat16)
    b_s3 = jax.random.uniform(keys[12], (inter3,), jnp.float32, -bound3, bound3)
    w_m3 = jax.random.uniform(keys[13], (inter3, hidden3), jnp.float32,
                              -bound3, bound3).astype(jnp.bfloat16)
    b_m3 = jax.random.uniform(keys[14], (inter3,), jnp.float32, -bound3, bound3)

    prep3 = prepare_gate_up(w_s3, b_s3, w_m3, b_m3)
    out3 = jax.block_until_ready(linear_silu_mul_prepared(x3, prep3))
    ref3 = _reference(x3, w_s3, b_s3, w_m3, b_m3)
    assert out3.shape == (batch3, seq3, inter3)
    assert jnp.allclose(out3.astype(jnp.float32), ref3, atol=3e-2, rtol=5e-2), \
        "test3 mismatch"

    # TODO(synk): the tpp / woq quantized fast paths call IPEX custom ops with
    # opaque packed-weight handles; only the math-equivalent fallback
    # (silu(linear_s(x)) * linear_m(x)) is implemented here.
    print("KERNEL_OK")
</pallas_src>

<mosaic_0001>
module attributes {stable_mosaic.version = 11 : i64} {
  func.func @_gate_up_kernel_single_k(%arg0: i32, %arg1: i32, %arg2: memref<8x128xf32, #tpu.memory_space<vmem>>, %arg3: memref<128x256xf32, #tpu.memory_space<vmem>>, %arg4: memref<1x256xf32, #tpu.memory_space<vmem>>, %arg5: memref<8x128xf32, #tpu.memory_space<vmem>>) attributes {dimension_semantics = [#tpu.dimension_semantics<parallel>, #tpu.dimension_semantics<parallel>], iteration_bounds = array<i64: 2, 1>, scalar_prefetch = 0 : i64, scratch_operands = 0 : i64, tpu.core_type = #tpu.core_type<tc>, window_params = [{transform_indices = @transform_0, window_bounds = array<i64: 8, 128>}, {transform_indices = @transform_1, window_bounds = array<i64: 128, 256>}, {transform_indices = @transform_2, window_bounds = array<i64: 1, 256>}, {transform_indices = @transform_3, window_bounds = array<i64: 8, 128>}]} {
    %c0 = arith.constant 0 : index
    %c0_0 = arith.constant 0 : index
    %0 = vector.load %arg2[%c0, %c0_0] : memref<8x128xf32, #tpu.memory_space<vmem>>, vector<8x128xf32>
    %c0_1 = arith.constant 0 : index
    %c0_2 = arith.constant 0 : index
    %1 = vector.load %arg3[%c0_1, %c0_2] : memref<128x256xf32, #tpu.memory_space<vmem>>, vector<128x256xf32>
    %cst = arith.constant dense<0.000000e+00> : vector<8x256xf32>
    %2 = tpu.matmul %0, %1, %cst {dimension_numbers = #tpu.dot_dimension_numbers<[1], [0], [0], [1], [0, 0, 1, 1], [], []>} : vector<8x128xf32>, vector<128x256xf32>, vector<8x256xf32> -> vector<8x256xf32>
    %c0_3 = arith.constant 0 : index
    %c0_4 = arith.constant 0 : index
    %3 = vector.load %arg4[%c0_3, %c0_4] : memref<1x256xf32, #tpu.memory_space<vmem>>, vector<1x256xf32>
    %4 = vector.broadcast %3 : vector<1x256xf32> to vector<8x256xf32>
    %5 = arith.addf %2, %4 : vector<8x256xf32>
    %6 = vector.extract_strided_slice %5 {offsets = [0, 0], sizes = [8, 128], strides = [1, 1]} : vector<8x256xf32> to vector<8x128xf32>
    %7 = vector.extract_strided_slice %5 {offsets = [0, 128], sizes = [8, 128], strides = [1, 1]} : vector<8x256xf32> to vector<8x128xf32>
    %8 = arith.negf %6 : vector<8x128xf32>
    %9 = math.exp %8 : vector<8x128xf32>
    %cst_5 = arith.constant 1.000000e+00 : f32
    %10 = vector.broadcast %cst_5 : f32 to vector<8x128xf32>
    %11 = arith.addf %10, %9 : vector<8x128xf32>
    %12 = arith.divf %10, %11 : vector<8x128xf32>
    %13 = arith.mulf %6, %12 : vector<8x128xf32>
    %14 = arith.mulf %13, %7 : vector<8x128xf32>
    %c0_6 = arith.constant 0 : index
    %c0_7 = arith.constant 0 : index
    %15 = vector.load %arg5[%c0_6, %c0_7] : memref<8x128xf32, #tpu.memory_space<vmem>>, vector<8x128xf32>
    tpu.vector_store %arg5[%c0_6, %c0_7], %14 {strides = array<i32>} : memref<8x128xf32, #tpu.memory_space<vmem>>, vector<8x128xf32>,
    return
  }
  func.func @transform_0(%arg0: i32, %arg1: i32) -> (i32, i32) {
    %c0_i32 = arith.constant 0 : i32
    %c0_i32_0 = arith.constant 0 : i32
    return %arg0, %c0_i32 : i32, i32
  }
  func.func @transform_1(%arg0: i32, %arg1: i32) -> (i32, i32) {
    %c0_i32 = arith.constant 0 : i32
    %c0_i32_0 = arith.constant 0 : i32
    return %c0_i32, %arg1 : i32, i32
  }
  func.func @transform_2(%arg0: i32, %arg1: i32) -> (i32, i32) {
    %c0_i32 = arith.constant 0 : i32
    %c0_i32_0 = arith.constant 0 : i32
    return %c0_i32, %arg1 : i32, i32
  }
  func.func @transform_3(%arg0: i32, %arg1: i32) -> (i32, i32) {
    %c0_i32 = arith.constant 0 : i32
    return %arg0, %arg1 : i32, i32
  }
}

</mosaic_0001>

<bundles_post_ra>
// kernel: _linear_silu_mul_impl.1
= control target key start
LH: loop header
LB: loop body
LE: loop exit
PB: predicated region body
PF: predicated region fallthrough
CT: control target
= control target key end

     0   :  { %8 = vsyncpa [#allocation3], 0  ;;  %s619_s12 = smov 0   ;;  %s621_s13 = smov 0   ;;  %s701_s0 = inlined_call_operand.vmem [shape: f32[16,128], index: 0, kind: input, shape index: {}]   ;;  %s702_s1 = inlined_call_operand.hbm [shape: f32[128,256], index: 1, kind: input, shape index: {}]   ;;  %s703_s2 = inlined_call_operand.vmem [shape: f32[1,256], index: 2, kind: input, shape index: {}]   ;;  %s704_s3 = inlined_call_operand.vmem [shape: f32[16,128], index: 3, kind: output, shape index: {}]  }
   0x1   :  { %s623_s14 = smov 0  }
   0x2 LB: > { %s452_s15 = sadd.s32 4294967295, %s593_s14   ;;  %s26_s16 = sadd.s32 1, %s589_s13  ;;  %s593_s14 = sphi %s623_s14, %s14_s14   ;;  %s589_s13 = sphi %s621_s13, %s714_s13   ;;  %s585_s12 = sphi %s619_s12, %s713_s12  }
   0x3   : > { %p28_p0 = scmp.ge.s32.totalorder %s26_s16, 2  ;;  %p454_p1 = scmp.ge.s32.totalorder %s593_s14, 1 }
   0x4   : > { %p137_p2 = scmp.lt.s32.totalorder %s593_s14, 3  ;;  %p644_p4 = scmp.eq.s32.totalorder %s452_s15, 0 }
   0x5   : > { %s716_s16 = smov (%p28_p0, %s26_s16), 0  ;;  %s595_s19 = smov [#allocation2]  }
   0x6   : > { %p640_p3 = pnand %p454_p1, %p137_p2  ;;  %s152_s20 = sshll.u32 %s595_s19, 4  ;;  %s153_s20 = int_to_ptr.vmem [resolvable:$true] %s152_s20 }
   0x7   : > { %s709_s18 = scalar_select %p644_p4, 1, 0 }
   0x8   : > { %s708_s17 = scalar_select %p640_p3, 1, 0 }
   0x9   : > { %p501_p5 = pneg %p640_p3  ;;  %s539_s24 = scalar_lea.hbm %s702_s1, 4096 }
   0xa   : > { %p540_p7 = scmp.ne.s32.totalorder %s702_s1, %s539_s24  ;;  %p546_p11 = scmp.lt.u32.totalorder %s539_s24, %s702_s1 }
   0xb   : > { %p652_p6 = pnand %p644_p4, %p501_p5 }
   0xd   : > { %p541_p8 = pneg %p652_p6 }
   0xf   : > { %p542_p9 = pnand %p541_p8, %p540_p7 }
  0x11   : > { %p543_p10 = pneg %p542_p9 }
  0x13   : > { %p548_p12 = pnand %p546_p11, %p543_p10 }
  0x15   : > { %551 = shalt.err (!%p548_p12)
}
  0x16   : > { %s552_s29 = scalar_lea.vmem %s153_s20, 4096  ;;  %p560_p2 = scmp.lt.s32.totalorder %s153_s20, %s153_s20 }
  0x17   : > { %p553_p13 = scmp.ne.s32.totalorder %s153_s20, %s552_s29  ;;  %p561_p5 = scmp.lt.s32.totalorder %s552_s29, %s552_s29 }
  0x19   : > { %p555_p0 = pnand %p553_p13, %p541_p8  ;;  %p562_p4 = por %p561_p5, %p560_p2 }
  0x1b   : > { %p556_p1 = pneg %p555_p0 }
  0x1d   : > { %p563_p3 = pnand %p562_p4, %p556_p1 }
  0x1f   : > { %566 = shalt.err (!%p563_p3)
}
  0x20   : > { %s596_s30 = smov 256   ;;  %s597_s4 = smov 16  }
  0x21   : > { %504 = dma.hbm_to_vmem [thread:$0]  (!%p652_p6), %s702_s1, 4096, %s153_s20, [#allocation3], %s596_s30, %s596_s30, %s597_s4  }
  0x22   : > { %p711_p7 = scmp.ne.s32.totalorder %s708_s17, 0 }
  0x23   : > { %p712_p9 = scmp.ne.s32.totalorder (!%p711_p7), %s709_s18, 0 }
  0x24   : > { %183 = sbr.rel (%p711_p7) target bundleno = 324 (0x144), region = 32 }
  0x2b   : > { %580 = dma.done.wait (%p712_p9), [#allocation3], 4096  }
  0x2c   : > { %582 = vsyncadd (%p712_p9), [#allocation3], 4294963200  ;;  %v598_v0 = vmov 0.0   ;;  %v231_v1 = vld [vmem:[#allocation2 + $0x8] sm:$0xff]  ;;  %v233_v2 = vld [vmem:[#allocation2 + $0x18] sm:$0xff]  ;;  %p212_p3 = scmp.lt.s32.totalorder %s585_s12, 1  ;;  %v264_v50 = vlaneseq }
  0x2d   : > { %338 = vmatprep.mubr.f32.mxu0 %v598_v0  ;;  %v230_v3 = vld [vmem:[#allocation2] sm:$0xff]  ;;  %v465_v4 = vpack.c.bf16 %v233_v2, %v231_v1  ;;  %v232_v5 = vld [vmem:[#allocation2 + $0x10] sm:$0xff]  ;;  %v235_v6 = vld [vmem:[#allocation2 + $0x28] sm:$0xff] }
  0x2e   : > { %v237_v7 = vld [vmem:[#allocation2 + $0x38] sm:$0xff]  ;;  %v467_v8 = vpack.c.bf16 %v232_v5, %v230_v3  ;;  %v234_v10 = vld [vmem:[#allocation2 + $0x20] sm:$0xff]  ;;  %v236_v11 = vld [vmem:[#allocation2 + $0x30] sm:$0xff]  ;;  %s718_s12 = smov (!%p212_p3, %s585_s12), 1  ;;  %v265_v51 = vshrl.u32 %v264_v50, 7 }
  0x2f   : > { %v469_v9 = vpack.c.bf16 %v237_v7, %v235_v6  ;;  %v239_v12 = vld [vmem:[#allocation2 + $0x48] sm:$0xff]  ;;  %466 = vmatprep.subr.bf16.mxu0 %v465_v4  ;;  %v241_v13 = vld [vmem:[#allocation2 + $0x58] sm:$0xff]  ;;  %v471_v14 = vpack.c.bf16 %v236_v11, %v234_v10  ;;  %v238_v16 = vld [vmem:[#allocation2 + $0x40] sm:$0xff]  ;;  %s460_s7 = sshll.u32 %s718_s12, 3 }
  0x30   : > { %468 = vmatpush1.bf16.msra.mxu0 %v467_v8  ;;  %v473_v15 = vpack.c.bf16 %v241_v13, %v239_v12  ;;  %v240_v17 = vld [vmem:[#allocation2 + $0x50] sm:$0xff]  ;;  %v243_v18 = vld [vmem:[#allocation2 + $0x68] sm:$0xff]  ;;  %v245_v19 = vld [vmem:[#allocation2 + $0x78] sm:$0xff]  ;;  %s215_s10 = scalar_lea.vmem %s701_s0, %s460_s7  ;;  %v266_v52 = vsub.s32 0, %v265_v51  ;;  %v270_v61 = vsub.s32 1, %v265_v51  ;;  %s228_s18 = scalar_lea.vmem %s704_s3, %s460_s7 }
  0x31   : > { %470 = vmatprep.subr.bf16.mxu0 %v469_v9  ;;  %v475_v20 = vpack.c.bf16 %v240_v17, %v238_v16  ;;  %v477_v21 = vpack.c.bf16 %v245_v19, %v243_v18  ;;  %v242_v22 = vld [vmem:[#allocation2 + $0x60] sm:$0xff]  ;;  %v244_v23 = vld [vmem:[#allocation2 + $0x70] sm:$0xff]  ;;  %v247_v24 = vld [vmem:[#allocation2 + $0x88] sm:$0xff] }
  0x32   : > { %v249_v25 = vld [vmem:[#allocation2 + $0x98] sm:$0xff]  ;;  %v479_v26 = vpack.c.bf16 %v244_v23, %v242_v22  ;;  %v246_v28 = vld [vmem:[#allocation2 + $0x80] sm:$0xff]  ;;  %v248_v29 = vld [vmem:[#allocation2 + $0x90] sm:$0xff] }
  0x33   : > { %v481_v27 = vpack.c.bf16 %v249_v25, %v247_v24  ;;  %v251_v30 = vld [vmem:[#allocation2 + $0xa8] sm:$0xff]  ;;  %v253_v31 = vld [vmem:[#allocation2 + $0xb8] sm:$0xff]  ;;  %v483_v32 = vpack.c.bf16 %v248_v29, %v246_v28  ;;  %v250_v34 = vld [vmem:[#allocation2 + $0xa0] sm:$0xff] }
  0x34   : > { %472 = vmatpush1.bf16.msra.mxu0 %v471_v14  ;;  %v485_v33 = vpack.c.bf16 %v253_v31, %v251_v30  ;;  %v252_v35 = vld [vmem:[#allocation2 + $0xb0] sm:$0xff]  ;;  %v255_v36 = vld [vmem:[#allocation2 + $0xc8] sm:$0xff]  ;;  %v257_v37 = vld [vmem:[#allocation2 + $0xd8] sm:$0xff] }
  0x35   : > { %474 = vmatprep.subr.bf16.mxu0 %v473_v15  ;;  %v487_v38 = vpack.c.bf16 %v252_v35, %v250_v34  ;;  %v489_v39 = vpack.c.bf16 %v257_v37, %v255_v36  ;;  %v254_v40 = vld [vmem:[#allocation2 + $0xc0] sm:$0xff]  ;;  %v256_v41 = vld [vmem:[#allocation2 + $0xd0] sm:$0xff]  ;;  %v259_v42 = vld [vmem:[#allocation2 + $0xe8] sm:$0xff] }
  0x36   : > { %v261_v43 = vld [vmem:[#allocation2 + $0xf8] sm:$0xff]  ;;  %v491_v44 = vpack.c.bf16 %v256_v41, %v254_v40  ;;  %v258_v46 = vld [vmem:[#allocation2 + $0xe0] sm:$0xff]  ;;  %v260_v47 = vld [vmem:[#allocation2 + $0xf0] sm:$0xff] }
  0x37   : > { %v493_v45 = vpack.c.bf16 %v261_v43, %v259_v42  ;;  %v495_v48 = vpack.c.bf16 %v260_v47, %v258_v46  ;;  %v229_v49 = vld [vmem:[%s215_s10] sm:$0xff] }
  0x38   : > { %476 = vmatpush1.bf16.msra.mxu0 %v475_v20  ;;  %v262_v53 = vld [vmem:[%s703_s2] sm:$0x3] }
  0x39   : > { %478 = vmatprep.subr.bf16.mxu0 %v477_v21  ;;  %v267_v54 = vrot.slane %v262_v53, %v266_v52  ;;  %v271_v62 = vrot.slane %v262_v53, %v270_v61 }
  0x3c   : > { %480 = vmatpush1.bf16.msra.mxu0 %v479_v26 }
  0x3d   : > { %482 = vmatprep.subr.bf16.mxu0 %v481_v27 }
  0x40   : > { %484 = vmatpush1.bf16.msra.mxu0 %v483_v32 }
  0x41   : > { %486 = vmatprep.subr.bf16.mxu0 %v485_v33 }
  0x44   : > { %488 = vmatpush1.bf16.msra.mxu0 %v487_v38 }
  0x45   : > { %490 = vmatprep.subr.bf16.mxu0 %v489_v39 }
  0x48   : > { %492 = vmatpush1.bf16.msra.mxu0 %v491_v44 }
  0x49   : > { %494 = vmatprep.subr.bf16.mxu0 %v493_v45 }
  0x4c   : > { %496 = vmatpush1.bf16.msra.mxu0 %v495_v48 }
  0x4f   : > { %339 = vmatmul.mubr.f32.vlgmr.msra.gmra.mrb[0].mxu0 %v229_v49 }
 0x122   : > { %v340_v55 = vpop.f32.mrb[0].mxu0 }
 0x123   : > { %v341_v56 = vadd.f32 %v340_v55, %v267_v54  ;;  %v342_v57 = vpop.f32.mrb[1].mxu0 }
 0x124   : > { %v343_v1 = vadd.f32 %v342_v57, %v271_v62 }
 0x125   : > { %v462_v58 = vmul.f32 -1.442695, %v341_v56 }
 0x127   : > { %535 = vpow2.f32 %v462_v58 }
 0x131   : > { %v536_v59 = vpop.eup %535 }
 0x132   : > { %v348_v60 = vadd.f32 1.0, %v536_v59 }
 0x134   : > { %537 = vrcp.f32 %v348_v60 }
 0x13e   : > { %v538_v63 = vpop.eup %537 }
 0x13f   : > { %v351_v0 = vmul.f32 %v538_v63, %v341_v56 }
 0x141   : > { %v352_v2 = vmul.f32 %v351_v0, %v343_v1 }
 0x143   : > { %353 = vst [vmem:[%s228_s18] sm:$0xff] %v352_v2 }
 0x144 PF: > { %s14_s14 = sadd.s32 1, %s593_s14   ;;  %s713_s12 = smov %s589_s13 }
 0x145   : > { %p11_p4 = scmp.ge.s32.totalorder %s14_s14, 4   ;;  %s714_s13 = smov %s716_s16 }
 0x147   :  { %13 = sbr.rel (!%p11_p4) target bundleno = 2 (0x2), region = 71 }
 0x14e   :  { %379 = vsyncpa [#allocation3], 1 }
 0x14f   :  { %381 = vsyncpa [#allocation3 + $0x1], 1 }

</bundles_post_ra>
